<compile_context>
chip_gen: v7x
topology: tpu7x:2x2x1
jax: 0.10.0
libtpu: 0.0.40
codegen_flags: <defaults>
</compile_context>

<pallas_src>
import functools

import jax
import jax.numpy as jnp
from jax.experimental import pallas as pl
from jax.experimental.pallas import tpu as pltpu

LANE = 128
SUBLANE = 8


def _round_up(v, m):
    return (v + m - 1) // m * m


def _leaky_relu(x, negative_slope=0.01):
    # max(x, a*x) == LeakyReLU(x) for 0 < a < 1; single vmax on the VPU.
    return jnp.maximum(x, negative_slope * x)


def _mlp_allocator_kernel(x_ref, w1_ref, b1_ref, w2_ref, b2_ref, w3_ref, b3_ref,
                          o_ref, *, matmul_dtype):
    # Matmuls hit the MXU with f32 accumulation; bias / LeakyReLU / softmax
    # stay f32 on the VPU (v5e has no bf16 VPU/EUP); exp goes to the EUP.
    x = x_ref[...]  # already matmul_dtype (cast once in the wrapper)

    h1 = jnp.dot(x, w1_ref[...], preferred_element_type=jnp.float32)
    h1 = _leaky_relu(h1 + b1_ref[...])

    h2 = jnp.dot(h1.astype(matmul_dtype), w2_ref[...],
                 preferred_element_type=jnp.float32)
    h2 = _leaky_relu(h2 + b2_ref[...])

    logits = jnp.dot(h2.astype(matmul_dtype), w3_ref[...],
                     preferred_element_type=jnp.float32)
    # Padded A columns carry a -1e30 bias (folded into b3 in the wrapper), so
    # no per-tile iota/select mask is needed here.
    logits = logits + b3_ref[...]

    # Numerically-stable softmax with an EXACT divide so rows sum to 1 within
    # f32 rounding (the approx reciprocal broke the normalization check).
    m = jnp.max(logits, axis=-1, keepdims=True)
    e = jnp.exp(logits - m)
    s = jnp.sum(e, axis=-1, keepdims=True)
    o_ref[...] = (e / s).astype(o_ref.dtype)


def _resident_spec(shape):
    """BlockSpec for a weight/bias block whose index_map is constant.

    Single-buffered: re-fetching the same block every grid step is free
    (Pallas keeps it resident) and double-buffering it only burns VMEM.
    Falls back to the default pipeline mode on jax versions without
    pipeline_mode / pl.Buffered.
    """
    try:
        return pl.BlockSpec(shape, lambda i: (0, 0), pipeline_mode=pl.Buffered(1))
    except Exception:
        return pl.BlockSpec(shape, lambda i: (0, 0))


@functools.partial(jax.jit, static_argnames=("block_b", "matmul_dtype"))
def mlp_allocator_forward(x, params, *, block_b=None, matmul_dtype=jnp.bfloat16):
    """Fused MLPAllocator forward pass.

    x:      [B, state_dim] float32
    params: dict with w1 [S,H], b1 [1,H], w2 [H,H], b2 [1,H], w3 [H,A], b3 [1,A]
            (weights stored pre-transposed as [in_dim, out_dim]).
    matmul_dtype: jnp.bfloat16 (default; MXU-native on v5e/v6e/v7x) or
            jnp.float32 for strict parity.  Accumulation, bias, activations
            and softmax are always f32.
    """
    w1, b1 = params["w1"], params["b1"]
    w2, b2 = params["w2"], params["b2"]
    w3, b3 = params["w3"], params["b3"]

    B, S = x.shape
    H = w1.shape[1]
    A = w3.shape[1]

    is_bf16 = jnp.dtype(matmul_dtype) == jnp.dtype(jnp.bfloat16)
    mm_bytes = jnp.dtype(matmul_dtype).itemsize

    # ---- lane-dense padding of feature dims (layout plumbing only) ----
    H_pad = _round_up(H, LANE)
    A_pad = _round_up(A, LANE)

    # ---- batch tiling ----
    # bf16 min tile is (16, 128); f32 is (8, 128).  Prefer full MXU-height
    # multiples (256) for large batches, cap 1024 to amortize per-step cost.
    granule = 16 if is_bf16 else SUBLANE
    if block_b is None:
        if B <= 256:
            # Single grid step: on v7x, sharding a tiny batch across both
            # TensorCores would just duplicate the weight DMA traffic.
            block_b = _round_up(max(B, granule), granule)
        else:
            block_b = min(1024, _round_up(pl.cdiv(B, 2), 256))
    else:
        block_b = _round_up(block_b, granule)
    B_pad = _round_up(B, block_b)
    grid = (B_pad // block_b,)

    # ---- pad + cast operands once in the wrapper ----
    x_p = x
    if B_pad != B:
        x_p = jnp.pad(x_p, ((0, B_pad - B), (0, 0)))
    x_p = x_p.astype(matmul_dtype)

    w1_p = jnp.pad(w1, ((0, 0), (0, H_pad - H))).astype(matmul_dtype)
    w2_p = jnp.pad(w2, ((0, H_pad - H), (0, H_pad - H))).astype(matmul_dtype)
    w3_p = jnp.pad(w3, ((0, H_pad - H), (0, A_pad - A))).astype(matmul_dtype)
    b1_p = jnp.pad(b1, ((0, 0), (0, H_pad - H))).astype(jnp.float32)
    b2_p = jnp.pad(b2, ((0, 0), (0, H_pad - H))).astype(jnp.float32)
    # Padded action columns get a -1e30 bias; padded w3 columns are exactly
    # zero, so padded logits are exactly -1e30 and exp underflows to 0.
    b3_p = jnp.pad(b3.astype(jnp.float32), ((0, 0), (0, A_pad - A)),
                   constant_values=-1e30)

    # Only the batch dim is tiled; weights/biases are resident broadcasts.
    in_specs = [
        pl.BlockSpec((block_b, S), lambda i: (i, 0)),   # x (pipelined)
        _resident_spec((S, H_pad)),                     # w1
        _resident_spec((1, H_pad)),                     # b1
        _resident_spec((H_pad, H_pad)),                 # w2
        _resident_spec((1, H_pad)),                     # b2
        _resident_spec((H_pad, A_pad)),                 # w3
        _resident_spec((1, A_pad)),                     # b3
    ]
    out_specs = pl.BlockSpec((block_b, A_pad), lambda i: (i, 0))

    # ---- VMEM budget from the actual resident set (v7x has only 64 MiB) ----
    resident_bytes = (
        (S * H_pad + H_pad * H_pad + H_pad * A_pad) * mm_bytes  # weights (x1 buf)
        + (2 * H_pad + A_pad) * 4                                # biases
        + 2 * block_b * (S * mm_bytes + A_pad * 4)               # 2x x / out tiles
        + block_b * (2 * H_pad + 2 * A_pad) * 4                  # h1, h2, logits, exp
    )
    vmem_limit = int(min(56 * 1024 * 1024,                       # < v7x 64 MiB physical
                         max(16 * 1024 * 1024, 2 * resident_bytes)))

    cost = pl.CostEstimate(
        flops=2 * B_pad * (S * H_pad + H_pad * H_pad + H_pad * A_pad),
        transcendentals=B_pad * A_pad,
        bytes_accessed=(B_pad * S * mm_bytes
                        + (S * H_pad + H_pad * H_pad + H_pad * A_pad) * mm_bytes
                        + (2 * H_pad + A_pad) * 4
                        + B_pad * A_pad * 4),
    )

    # "parallel" batch sharding only when the batch is big enough that
    # duplicating weight DMAs across v7x's two TensorCores is worth it.
    dim_sem = ("parallel",) if (grid[0] > 1 and B > 256) else ("arbitrary",)

    kernel = functools.partial(_mlp_allocator_kernel, matmul_dtype=matmul_dtype)

    out_padded = pl.pallas_call(
        kernel,
        out_shape=jax.ShapeDtypeStruct((B_pad, A_pad), jnp.float32),
        grid_spec=pltpu.PrefetchScalarGridSpec(
            num_scalar_prefetch=0,
            grid=grid,
            in_specs=in_specs,
            out_specs=out_specs,
        ),
        compiler_params=pltpu.CompilerParams(
            dimension_semantics=dim_sem,
            vmem_limit_bytes=vmem_limit,
        ),
        cost_estimate=cost,
    )(x_p, w1_p, b1_p, w2_p, b2_p, w3_p, b3_p)

    return out_padded[:B, :A]


def init_mlp_allocator_params(key, state_dim, action_dim, hidden_dim):
    """Deterministic init mimicking nn.Linear default (uniform +-1/sqrt(fan_in)).

    Weights are stored as [in_dim, out_dim] (already transposed vs. torch).
    """
    ks = jax.random.split(key, 6)

    def linear(kw, kb, fan_in, fan_out):
        bound = 1.0 / jnp.sqrt(fan_in)
        w = jax.random.uniform(kw, (fan_in, fan_out), jnp.float32, -bound, bound)
        b = jax.random.uniform(kb, (1, fan_out), jnp.float32, -bound, bound)
        return w, b

    w1, b1 = linear(ks[0], ks[1], state_dim, hidden_dim)
    w2, b2 = linear(ks[2], ks[3], hidden_dim, hidden_dim)
    w3, b3 = linear(ks[4], ks[5], hidden_dim, action_dim)
    return {"w1": w1, "b1": b1, "w2": w2, "b2": b2, "w3": w3, "b3": b3}


def mlp_allocator_ref(x, params):
    """Pure-JAX reference for correctness checking."""
    h = _leaky_relu(x @ params["w1"] + params["b1"])
    h = _leaky_relu(h @ params["w2"] + params["b2"])
    logits = h @ params["w3"] + params["b3"]
    return jax.nn.softmax(logits, axis=-1)


if __name__ == "__main__":
    key = jax.random.PRNGKey(0)
    k_param, k_x = jax.random.split(key)

    batch = 8
    state_dim = 16
    action_dim = 8
    hidden_dim = 32

    params = init_mlp_allocator_params(k_param, state_dim, action_dim, hidden_dim)
    x = jax.random.normal(k_x, (batch, state_dim), dtype=jnp.float32)
    ref = mlp_allocator_ref(x, params)

    # Default path: bf16 MXU operands, f32 accumulation / softmax.
    out = jax.block_until_ready(mlp_allocator_forward(x, params))
    assert out.shape == (batch, action_dim)
    # Exact divide -> rows normalize to 1 within f32 rounding.
    assert jnp.allclose(jnp.sum(out, axis=-1), 1.0, atol=1e-3)
    assert jnp.allclose(out, ref, atol=5e-2, rtol=5e-2)

    # Full-f32 MXU path (strict parity with the reference).
    out_f32 = jax.block_until_ready(
        mlp_allocator_forward(x, params, matmul_dtype=jnp.float32))
    assert out_f32.shape == (batch, action_dim)
    assert jnp.allclose(jnp.sum(out_f32, axis=-1), 1.0, atol=1e-3)
    assert jnp.allclose(out_f32, ref, atol=1e-3, rtol=1e-3)

    # Ragged / multi-tile batch exercises block_b tiling + batch padding.
    xb = jax.random.normal(k_x, (37, state_dim), dtype=jnp.float32)
    out_b = jax.block_until_ready(mlp_allocator_forward(xb, params, block_b=32))
    assert out_b.shape == (37, action_dim)
    assert jnp.allclose(jnp.sum(out_b, axis=-1), 1.0, atol=1e-3)
    assert jnp.allclose(out_b, mlp_allocator_ref(xb, params),
                        atol=5e-2, rtol=5e-2)

    print("KERNEL_OK")
</pallas_src>

<mosaic_0001>
module attributes {stable_mosaic.version = 11 : i64} {
  func.func @_mlp_allocator_kernel(%arg0: i32, %arg1: memref<16x16xbf16, #tpu.memory_space<vmem>>, %arg2: memref<16x128xbf16, #tpu.memory_space<vmem>>, %arg3: memref<1x128xf32, #tpu.memory_space<vmem>>, %arg4: memref<128x128xbf16, #tpu.memory_space<vmem>>, %arg5: memref<1x128xf32, #tpu.memory_space<vmem>>, %arg6: memref<128x128xbf16, #tpu.memory_space<vmem>>, %arg7: memref<1x128xf32, #tpu.memory_space<vmem>>, %arg8: memref<16x128xf32, #tpu.memory_space<vmem>>) attributes {dimension_semantics = [#tpu.dimension_semantics<arbitrary>], iteration_bounds = array<i64: 1>, scalar_prefetch = 0 : i64, scratch_operands = 0 : i64, tpu.core_type = #tpu.core_type<tc>, window_params = [{transform_indices = @transform_0, window_bounds = array<i64: 16, 16>}, {pipeline_mode = #tpu.pipeline_mode<synchronous>, transform_indices = @transform_1, window_bounds = array<i64: 16, 128>}, {pipeline_mode = #tpu.pipeline_mode<synchronous>, transform_indices = @transform_2, window_bounds = array<i64: 1, 128>}, {pipeline_mode = #tpu.pipeline_mode<synchronous>, transform_indices = @transform_3, window_bounds = array<i64: 128, 128>}, {pipeline_mode = #tpu.pipeline_mode<synchronous>, transform_indices = @transform_4, window_bounds = array<i64: 1, 128>}, {pipeline_mode = #tpu.pipeline_mode<synchronous>, transform_indices = @transform_5, window_bounds = array<i64: 128, 128>}, {pipeline_mode = #tpu.pipeline_mode<synchronous>, transform_indices = @transform_6, window_bounds = array<i64: 1, 128>}, {transform_indices = @transform_7, window_bounds = array<i64: 16, 128>}]} {
    %c0 = arith.constant 0 : index
    %c0_0 = arith.constant 0 : index
    %0 = vector.load %arg1[%c0, %c0_0] : memref<16x16xbf16, #tpu.memory_space<vmem>>, vector<16x16xbf16>
    %c0_1 = arith.constant 0 : index
    %c0_2 = arith.constant 0 : index
    %1 = vector.load %arg2[%c0_1, %c0_2] : memref<16x128xbf16, #tpu.memory_space<vmem>>, vector<16x128xbf16>
    %cst = arith.constant dense<0.000000e+00> : vector<16x128xf32>
    %2 = tpu.matmul %0, %1, %cst {dimension_numbers = #tpu.dot_dimension_numbers<[1], [0], [0], [1], [0, 0, 1, 1], [], []>} : vector<16x16xbf16>, vector<16x128xbf16>, vector<16x128xf32> -> vector<16x128xf32>
    %c0_3 = arith.constant 0 : index
    %c0_4 = arith.constant 0 : index
    %3 = vector.load %arg3[%c0_3, %c0_4] : memref<1x128xf32, #tpu.memory_space<vmem>>, vector<1x128xf32>
    %4 = vector.broadcast %3 : vector<1x128xf32> to vector<16x128xf32>
    %5 = arith.addf %2, %4 : vector<16x128xf32>
    %cst_5 = arith.constant 0.00999999977 : f32
    %6 = vector.broadcast %cst_5 : f32 to vector<16x128xf32>
    %7 = arith.mulf %6, %5 : vector<16x128xf32>
    %8 = arith.maximumf %5, %7 : vector<16x128xf32>
    %9 = arith.truncf %8 : vector<16x128xf32> to vector<16x128xbf16>
    %c0_6 = arith.constant 0 : index
    %c0_7 = arith.constant 0 : index
    %10 = vector.load %arg4[%c0_6, %c0_7] : memref<128x128xbf16, #tpu.memory_space<vmem>>, vector<128x128xbf16>
    %cst_8 = arith.constant dense<0.000000e+00> : vector<16x128xf32>
    %11 = tpu.matmul %9, %10, %cst_8 {dimension_numbers = #tpu.dot_dimension_numbers<[1], [0], [0], [1], [0, 0, 1, 1], [], []>} : vector<16x128xbf16>, vector<128x128xbf16>, vector<16x128xf32> -> vector<16x128xf32>
    %c0_9 = arith.constant 0 : index
    %c0_10 = arith.constant 0 : index
    %12 = vector.load %arg5[%c0_9, %c0_10] : memref<1x128xf32, #tpu.memory_space<vmem>>, vector<1x128xf32>
    %13 = vector.broadcast %12 : vector<1x128xf32> to vector<16x128xf32>
    %14 = arith.addf %11, %13 : vector<16x128xf32>
    %cst_11 = arith.constant 0.00999999977 : f32
    %15 = vector.broadcast %cst_11 : f32 to vector<16x128xf32>
    %16 = arith.mulf %15, %14 : vector<16x128xf32>
    %17 = arith.maximumf %14, %16 : vector<16x128xf32>
    %18 = arith.truncf %17 : vector<16x128xf32> to vector<16x128xbf16>
    %c0_12 = arith.constant 0 : index
    %c0_13 = arith.constant 0 : index
    %19 = vector.load %arg6[%c0_12, %c0_13] : memref<128x128xbf16, #tpu.memory_space<vmem>>, vector<128x128xbf16>
    %cst_14 = arith.constant dense<0.000000e+00> : vector<16x128xf32>
    %20 = tpu.matmul %18, %19, %cst_14 {dimension_numbers = #tpu.dot_dimension_numbers<[1], [0], [0], [1], [0, 0, 1, 1], [], []>} : vector<16x128xbf16>, vector<128x128xbf16>, vector<16x128xf32> -> vector<16x128xf32>
    %c0_15 = arith.constant 0 : index
    %c0_16 = arith.constant 0 : index
    %21 = vector.load %arg7[%c0_15, %c0_16] : memref<1x128xf32, #tpu.memory_space<vmem>>, vector<1x128xf32>
    %22 = vector.broadcast %21 : vector<1x128xf32> to vector<16x128xf32>
    %23 = arith.addf %20, %22 : vector<16x128xf32>
    %cst_17 = arith.constant dense<0xFF800000> : vector<16xf32>
    %24 = vector.multi_reduction <maximumf>, %23, %cst_17 [1] : vector<16x128xf32> to vector<16xf32>
    %25 = vector.shape_cast %24 : vector<16xf32> to vector<16x1xf32>
    %26 = vector.broadcast %25 : vector<16x1xf32> to vector<16x128xf32>
    %27 = arith.subf %23, %26 : vector<16x128xf32>
    %28 = math.exp %27 : vector<16x128xf32>
    %cst_18 = arith.constant dense<0.000000e+00> : vector<16xf32>
    %29 = vector.multi_reduction <add>, %28, %cst_18 [1] : vector<16x128xf32> to vector<16xf32>
    %30 = vector.shape_cast %29 : vector<16xf32> to vector<16x1xf32>
    %31 = vector.broadcast %30 : vector<16x1xf32> to vector<16x128xf32>
    %32 = arith.divf %28, %31 : vector<16x128xf32>
    %c0_19 = arith.constant 0 : index
    %c0_20 = arith.constant 0 : index
    %33 = vector.load %arg8[%c0_19, %c0_20] : memref<16x128xf32, #tpu.memory_space<vmem>>, vector<16x128xf32>
    tpu.vector_store %arg8[%c0_19, %c0_20], %32 {strides = array<i32>} : memref<16x128xf32, #tpu.memory_space<vmem>>, vector<16x128xf32>,
    return
  }
  func.func @transform_0(%arg0: i32) -> (i32, i32) {
    %c0_i32 = arith.constant 0 : i32
    %c0_i32_0 = arith.constant 0 : i32
    return %arg0, %c0_i32 : i32, i32
  }
  func.func @transform_1(%arg0: i32) -> (i32, i32) {
    %c0_i32 = arith.constant 0 : i32
    %c0_i32_0 = arith.constant 0 : i32
    %c0_i32_1 = arith.constant 0 : i32
    return %c0_i32, %c0_i32_0 : i32, i32
  }
  func.func @transform_2(%arg0: i32) -> (i32, i32) {
    %c0_i32 = arith.constant 0 : i32
    %c0_i32_0 = arith.constant 0 : i32
    %c0_i32_1 = arith.constant 0 : i32
    return %c0_i32, %c0_i32_0 : i32, i32
  }
  func.func @transform_3(%arg0: i32) -> (i32, i32) {
    %c0_i32 = arith.constant 0 : i32
    %c0_i32_0 = arith.constant 0 : i32
    %c0_i32_1 = arith.constant 0 : i32
    return %c0_i32, %c0_i32_0 : i32, i32
  }
  func.func @transform_4(%arg0: i32) -> (i32, i32) {
    %c0_i32 = arith.constant 0 : i32
    %c0_i32_0 = arith.constant 0 : i32
    %c0_i32_1 = arith.constant 0 : i32
    return %c0_i32, %c0_i32_0 : i32, i32
  }
  func.func @transform_5(%arg0: i32) -> (i32, i32) {
    %c0_i32 = arith.constant 0 : i32
    %c0_i32_0 = arith.constant 0 : i32
    %c0_i32_1 = arith.constant 0 : i32
    return %c0_i32, %c0_i32_0 : i32, i32
  }
  func.func @transform_6(%arg0: i32) -> (i32, i32) {
    %c0_i32 = arith.constant 0 : i32
    %c0_i32_0 = arith.constant 0 : i32
    %c0_i32_1 = arith.constant 0 : i32
    return %c0_i32, %c0_i32_0 : i32, i32
  }
  func.func @transform_7(%arg0: i32) -> (i32, i32) {
    %c0_i32 = arith.constant 0 : i32
    %c0_i32_0 = arith.constant 0 : i32
    return %arg0, %c0_i32 : i32, i32
  }
}

</mosaic_0001>

<bundles_post_ra>
// kernel: mlp_allocator_forward.1
= control target key start
LH: loop header
LB: loop body
LE: loop exit
PB: predicated region body
PF: predicated region fallthrough
CT: control target
= control target key end

     0   :  { %v468_v0 = vmov 0.0   ;;  %vm469_vm0 = vmmov 0   ;;  %vm49_vm1 = vcmask 130048   ;;  %s599_s1 = inlined_call_operand.vmem [shape: bf16[16,128], index: 1, kind: input, shape index: {}]   ;;  %s600_s0 = inlined_call_operand.vmem [shape: bf16[16,16], index: 0, kind: input, shape index: {}]   ;;  %s601_s3 = inlined_call_operand.vmem [shape: bf16[128,128], index: 3, kind: input, shape index: {}]   ;;  %s602_s5 = inlined_call_operand.vmem [shape: bf16[128,128], index: 5, kind: input, shape index: {}]   ;;  %s603_s2 = inlined_call_operand.vmem [shape: f32[1,128], index: 2, kind: input, shape index: {}]   ;;  %s604_s4 = inlined_call_operand.vmem [shape: f32[1,128], index: 4, kind: input, shape index: {}]   ;;  %s605_s6 = inlined_call_operand.vmem [shape: f32[1,128], index: 6, kind: input, shape index: {}]   ;;  %s606_s7 = inlined_call_operand.vmem [shape: f32[16,128], index: 7, kind: output, shape index: {}]  }
   0x1   :  { %394 = vmatprep.subr.bf16.mxu0 %v468_v0  ;;  %v442_v1 = vld [vmem:[%s599_s1] sm:$0xff]   ;;  %396 = vmatprep.mubr.msk.bf16.mxu0 %vm469_vm0, %v468_v0  ;;  %v445_v4 = vld [vmem:[%s601_s3 + $0x8] sm:$0xff]   ;;  %v446_v5 = vld [vmem:[%s601_s3 + $0x10] sm:$0xff]  }
   0x2   :  { %v443_v2 = vld [vmem:[%s600_s0] sm:$0xff]   ;;  %400 = vmatprep.subr.bf16.mxu1 %v468_v0  ;;  %416 = vmatprep.mubr.msk.bf16.mxu1 %vm469_vm0, %v468_v0  ;;  %v447_v6 = vld [vmem:[%s601_s3 + $0x18] sm:$0xff]   ;;  %v449_v8 = vld [vmem:[%s601_s3 + $0x28] sm:$0xff]  }
   0x3   :  { %395 = vmatpush3.bf16.msra.mxu0 %v442_v1  ;;  %v444_v3 = vld [vmem:[%s601_s3] sm:$0xff]   ;;  %v450_v9 = vld [vmem:[%s601_s3 + $0x30] sm:$0xff]   ;;  %v451_v10 = vld [vmem:[%s601_s3 + $0x38] sm:$0xff]  }
   0x4   :  { %420 = vmatprep.subr.bf16.mxu0 %v468_v0  ;;  %401 = vmatpush3.bf16.msra.mxu1 %v444_v3  ;;  %v448_v7 = vld [vmem:[%s601_s3 + $0x20] sm:$0xff]   ;;  %v453_v12 = vld [vmem:[%s602_s5 + $0x8] sm:$0xff]   ;;  %v454_v13 = vld [vmem:[%s602_s5 + $0x10] sm:$0xff]  }
   0x5   :  { %402 = vmatprep.subr.bf16.mxu1 %v468_v0  ;;  %v452_v11 = vld [vmem:[%s602_s5] sm:$0xff]   ;;  %v455_v14 = vld [vmem:[%s602_s5 + $0x18] sm:$0xff]   ;;  %v457_v28 = vld [vmem:[%s602_s5 + $0x28] sm:$0xff]  }
   0x6   :  { %397 = vmatmul.mubr.msk.bf16.vlgmr.msra.gmra.mrb[0].mxu0 %vm49_vm1, %v443_v2  ;;  %v456_v15 = vld [vmem:[%s602_s5 + $0x20] sm:$0xff]   ;;  %v458_v29 = vld [vmem:[%s602_s5 + $0x30] sm:$0xff]   ;;  %v459_v30 = vld [vmem:[%s602_s5 + $0x38] sm:$0xff]  }
   0x7   :  { %436 = vmatprep.mubr.msk.bf16.mxu0 %vm469_vm0, %v468_v0  ;;  %421 = vmatpush3.bf16.msra.mxu0 %v452_v11  ;;  %v352_v16 = vld [vmem:[%s603_s2] ss:$0 sm:$0xff] }
   0x8   :  { %403 = vmatpush3.bf16.msra.mxu1 %v445_v4  ;;  %422 = vmatprep.subr.bf16.mxu0 %v468_v0  ;;  %v356_v31 = vld [vmem:[%s604_s4] ss:$0 sm:$0xff] }
   0x9   :  { %404 = vmatprep.subr.bf16.mxu1 %v468_v0  ;;  %v365_v43 = vld [vmem:[%s605_s6] ss:$0 sm:$0xff] }
   0xb   :  { %423 = vmatpush3.bf16.msra.mxu0 %v453_v12 }
   0xc   :  { %405 = vmatpush3.bf16.msra.mxu1 %v446_v5  ;;  %424 = vmatprep.subr.bf16.mxu0 %v468_v0 }
   0xd   :  { %406 = vmatprep.subr.bf16.mxu1 %v468_v0 }
   0xf   :  { %425 = vmatpush3.bf16.msra.mxu0 %v454_v13 }
  0x10   :  { %407 = vmatpush3.bf16.msra.mxu1 %v447_v6  ;;  %426 = vmatprep.subr.bf16.mxu0 %v468_v0 }
  0x11   :  { %408 = vmatprep.subr.bf16.mxu1 %v468_v0 }
  0x13   :  { %427 = vmatpush3.bf16.msra.mxu0 %v455_v14 }
  0x14   :  { %409 = vmatpush3.bf16.msra.mxu1 %v448_v7  ;;  %428 = vmatprep.subr.bf16.mxu0 %v468_v0 }
  0x15   :  { %410 = vmatprep.subr.bf16.mxu1 %v468_v0 }
  0x17   :  { %429 = vmatpush3.bf16.msra.mxu0 %v456_v15 }
  0x18   :  { %411 = vmatpush3.bf16.msra.mxu1 %v449_v8  ;;  %430 = vmatprep.subr.bf16.mxu0 %v468_v0 }
  0x19   :  { %412 = vmatprep.subr.bf16.mxu1 %v468_v0 }
  0x1b   :  { %431 = vmatpush3.bf16.msra.mxu0 %v457_v28 }
  0x1c   :  { %413 = vmatpush3.bf16.msra.mxu1 %v450_v9  ;;  %432 = vmatprep.subr.bf16.mxu0 %v468_v0 }
  0x1d   :  { %414 = vmatprep.subr.bf16.mxu1 %v468_v0 }
  0x1f   :  { %433 = vmatpush3.bf16.msra.mxu0 %v458_v29 }
  0x20   :  { %415 = vmatpush3.bf16.msra.mxu1 %v451_v10  ;;  %434 = vmatprep.subr.bf16.mxu0 %v468_v0 }
  0x23   :  { %435 = vmatpush3.bf16.msra.mxu0 %v459_v30 }
  0xd9   :  { %v87_v17 = vpop.f32.mrb[0].mxu0 }
  0xda   :  { %v88_v18 = vadd.f32 %v352_v16, %v87_v17  ;;  %v398_v19 = vpop.f32.mrb[1].mxu0 }
  0xdb   :  { %v90_v20 = vpop.f32.mrb[2].mxu0 }
  0xdc   :  { %v94_v21 = vmul.f32 0.01, %v88_v18  ;;  %v91_v22 = vadd.f32 %v352_v16, %v90_v20  ;;  %v399_v23 = vpop.f32.mrb[3].mxu0 }
  0xde   :  { %v95_v24 = vmul.f32 0.01, %v91_v22  ;;  %v96_v25 = vmax.f32 %v88_v18, %v94_v21 }
  0xe0   :  { %v97_v26 = vmax.f32 %v91_v22, %v95_v24 }
  0xe2   :  { %v98_v27 = vpack.c.bf16 %v97_v26, %v96_v25 }
  0xe4   :  { %417 = vmatmul.mubr.bf16.vlgmr.msra.gmra.mrb[0].mxu1 %v98_v27 }
 0x1b7   :  { %v204_v32 = vpop.f32.mrb[0].mxu1 }
 0x1b8   :  { %v205_v33 = vadd.f32 %v356_v31, %v204_v32  ;;  %v418_v34 = vpop.f32.mrb[1].mxu1 }
 0x1b9   :  { %v207_v35 = vpop.f32.mrb[2].mxu1 }
 0x1ba   :  { %v211_v36 = vmul.f32 0.01, %v205_v33  ;;  %v208_v37 = vadd.f32 %v356_v31, %v207_v35  ;;  %v419_v38 = vpop.f32.mrb[3].mxu1 }
 0x1bc   :  { %v212_v39 = vmul.f32 0.01, %v208_v37  ;;  %v213_v40 = vmax.f32 %v205_v33, %v211_v36 }
 0x1be   :  { %v214_v41 = vmax.f32 %v208_v37, %v212_v39 }
 0x1c0   :  { %v215_v42 = vpack.c.bf16 %v214_v41, %v213_v40 }
 0x1c2   :  { %437 = vmatmul.mubr.bf16.vlgmr.msra.gmra.mrb[4].mxu0 %v215_v42 }
 0x295   :  { %v321_v44 = vpop.f32.mrb[4].mxu0 }
 0x296   :  { %v322_v45 = vadd.f32 %v365_v43, %v321_v44  ;;  %v438_v46 = vpop.f32.mrb[5].mxu0 }
 0x297   :  { %v324_v47 = vpop.f32.mrb[6].mxu0 }
 0x298   :  { %328 = vmax.xlane.f32.xlu0 %v322_v45  ;;  %v439_v48 = vpop.f32.mrb[7].mxu0  ;;  %v325_v49 = vadd.f32 %v365_v43, %v324_v47 }
 0x29c   :  { %330 = vmax.xlane.f32.xlu0 %v325_v49 }
 0x325   :  { %v329_v50 = vpop.xlane.xlu0 %328 }
 0x326   :  { %v332_v51 = vsub.f32 %v322_v45, %v329_v50 }
 0x328   :  { %v334_v52 = vmul.f32 1.442695, %v332_v51 }
 0x329   :  { %v331_v53 = vpop.xlane.xlu0 %330 }
 0x32a   :  { %460 = vpow2.f32 %v334_v52  ;;  %v333_v54 = vsub.f32 %v325_v49, %v331_v53 }
 0x32c   :  { %v336_v55 = vmul.f32 1.442695, %v333_v54 }
 0x32e   :  { %462 = vpow2.f32 %v336_v55 }
 0x334   :  { %v461_v56 = vpop.eup %460 }
 0x335   :  { %338 = vadd.xlane.f32.xlu1 %v461_v56 }
 0x338   :  { %v463_v57 = vpop.eup %462 }
 0x339   :  { %340 = vadd.xlane.f32.xlu1 %v463_v57 }
 0x3c2   :  { %v339_v58 = vpop.xlane.xlu1 %338 }
 0x3c3   :  { %464 = vrcp.f32 %v339_v58 }
 0x3c6   :  { %v341_v59 = vpop.xlane.xlu1 %340 }
 0x3c7   :  { %466 = vrcp.f32 %v341_v59 }
 0x3cd   :  { %v465_v60 = vpop.eup %464 }
 0x3ce   :  { %v343_v61 = vmul.f32 %v465_v60, %v461_v56 }
 0x3d0   :  { %346 = vst [vmem:[%s606_s7] sm:$0xff] %v343_v61 }
 0x3d1   :  { %v467_v62 = vpop.eup %466 }
 0x3d2   :  { %v345_v63 = vmul.f32 %v467_v62, %v463_v57 }
 0x3d4   :  { %347 = vst [vmem:[%s606_s7 + $0x8] sm:$0xff] %v345_v63 }

</bundles_post_ra>
